<compile_context>
chip_gen: v7x
topology: tpu7x:2x2x1
jax: 0.10.0
libtpu: 0.0.40
codegen_flags: <defaults>
</compile_context>

<pallas_src>
import functools

import numpy as np
import jax
import jax.numpy as jnp
from jax.experimental import pallas as pl
from jax.experimental.pallas import tpu as pltpu


def _round_up(a, b):
    return (a + b - 1) // b * b


def _elu(x):
    # ELU(alpha=1): x if x > 0 else exp(x) - 1.  exp arg clamped so the
    # unselected branch cannot overflow; exp goes to the EUP slot.
    return jnp.where(x > 0, x, jnp.exp(jnp.minimum(x, 0.0)) - 1.0)


def _residual_unit_kernel(x_ref, halo_ref, wc_ref, bc_ref, w1_ref, b1_ref,
                          o_ref, hp_ref, *, dilation, t_tile, pad8):
    """One (batch, time-tile) step of  y = x + Conv1x1(ELU(CausalConv_k7_d(x)))."""
    d = dilation
    pad = 6 * d                       # causal receptive field
    tt = t_tile

    # ---- fill the causal scratch: [align-pad | halo | current tile] --------
    # Both stores start at sublane offsets that are multiples of 8 (0 and
    # pad8), so the dominant (tt, Cp) write is an unmasked vst.
    hp_ref[0:pad8, :] = halo_ref[0, 0].astype(jnp.float32)
    hp_ref[pad8:pad8 + tt, :] = x_ref[0].astype(jnp.float32)

    base = pad8 - pad                 # scratch row holding tap-0's oldest frame

    # ---- 7-tap dilated causal conv: tap-wise accumulated matmuls -----------
    # tap j of output frame r reads hp[base + j*d + r]  (== x[r - (6-j)*d]).
    # Operands cast to the weight dtype (bf16 by default) at the MXU boundary
    # only; accumulation stays f32.
    # (On v6e/v7x with Cp==128 taps could be paired for K=256, but that would
    #  reintroduce a spilled concatenated intermediate; kept tap-wise.)
    acc = jnp.dot(hp_ref[base:base + tt, :].astype(wc_ref.dtype), wc_ref[0],
                  preferred_element_type=jnp.float32)
    for j in range(1, 7):
        lo = base + j * d
        acc = acc + jnp.dot(hp_ref[lo:lo + tt, :].astype(wc_ref.dtype),
                            wc_ref[j], preferred_element_type=jnp.float32)

    h = _elu(acc + bc_ref[...].astype(jnp.float32))

    # ---- 1x1 conv + residual add (x re-read from the resident scratch) -----
    h = jnp.dot(h.astype(w1_ref.dtype), w1_ref[...],
                preferred_element_type=jnp.float32)
    h = h + b1_ref[...].astype(jnp.float32)
    o_ref[0] = (hp_ref[pad8:pad8 + tt, :] + h).astype(o_ref.dtype)


def _prep_weights(params, C, Cp, compute_dtype):
    """Host-side weight prep: transpose to matmul layout, zero-pad channels."""
    pc = Cp - C
    wc = jnp.asarray(params["wc"], jnp.float32)              # torch (Cout, Cin, 7)
    wc = jnp.transpose(wc, (2, 1, 0))                        # (7, Cin, Cout)
    wc = jnp.pad(wc, ((0, 0), (0, pc), (0, pc))).astype(compute_dtype)  # (7, Cp, Cp)

    bc = jnp.pad(jnp.asarray(params["bc"], jnp.float32), (0, pc)).reshape(1, Cp)

    w1 = jnp.asarray(params["w1"], jnp.float32)[:, :, 0]     # torch (Cout, Cin)
    w1 = jnp.pad(jnp.transpose(w1, (1, 0)), ((0, pc), (0, pc))).astype(compute_dtype)

    b1 = jnp.pad(jnp.asarray(params["b1"], jnp.float32), (0, pc)).reshape(1, Cp)
    return wc, bc, w1, b1


def soundstream_residual_unit(x_ncl, params, *, dilation, t_tile=1024,
                              compute_dtype=jnp.bfloat16):
    """x_ncl: (B, C, T) float32 (PyTorch NCL).  Returns (B, C, T) float32."""
    B, C, T = x_ncl.shape
    d = int(dilation)
    pad = 6 * d
    pad8 = _round_up(pad, 8)

    Cp = _round_up(max(C, 128), 128)                 # lane-dense channels
    wbytes = jnp.asarray(0, compute_dtype).dtype.itemsize

    # --- generation-aware tile size / VMEM budget ---------------------------
    try:
        info = pltpu.get_tpu_info()
        vmem_cap = int(getattr(info, "vmem_capacity_bytes", 64 << 20))
    except Exception:  # pragma: no cover - conservative fallback (v7x figure)
        vmem_cap = 64 << 20

    def _working_set(tt_):
        tiles = 2 * (2 * tt_ * Cp * 4)               # x + out tiles, double-buffered
        halo_b = 2 * pad8 * Cp * 4                   # tails block, double-buffered
        weights = 2 * (8 * Cp * Cp * wbytes + 2 * Cp * 4)   # wc + w1 (+ biases)
        scratch = (pad8 + tt_) * Cp * 4              # hp_ref
        interm = 2 * tt_ * Cp * 4                    # acc + h live f32 values
        return tiles + halo_b + weights + scratch + interm

    tt = _round_up(max(min(int(t_tile), _round_up(T, 8)), 8), 8)
    budget = int(vmem_cap * 0.7)
    while _working_set(tt) > budget and tt > 64:
        tt = _round_up(max(tt // 2, 64), 8)

    Tp = _round_up(T, tt)
    nt = Tp // tt

    # Channels-last, zero-padded to (B, Tp, Cp).
    x = jnp.transpose(x_ncl, (0, 2, 1)).astype(jnp.float32)          # (B, T, C)
    x = jnp.pad(x, ((0, 0), (0, Tp - T), (0, Cp - C)))               # (B, Tp, Cp)

    # Halo-only tails: the 6*d frames preceding each tile (zeros before t=0),
    # stored sublane-aligned in the LAST `pad` rows of a pad8-row block.
    xh = jnp.pad(x, ((0, 0), (pad, 0), (0, 0)))                      # (B, Tp+pad, Cp)
    idx = jnp.arange(nt)[:, None] * tt + jnp.arange(pad)[None, :]    # (nt, pad)
    tails = xh[:, idx, :]                                            # (B, nt, pad, Cp)
    tails = jnp.pad(tails, ((0, 0), (0, 0), (pad8 - pad, 0), (0, 0)))

    wc, bc, w1, b1 = _prep_weights(params, C, Cp, compute_dtype)

    kernel = functools.partial(_residual_unit_kernel, dilation=d,
                               t_tile=tt, pad8=pad8)

    tile_spec = pl.BlockSpec((1, tt, Cp), lambda b, t: (b, t, 0))
    # NOTE: weight/bias blocks have constant index maps; Pallas skips the
    # re-DMA but still double-buffers them (pl.Buffered(1) would reclaim that
    # copy; omitted here for compile safety).
    grid_spec = pltpu.PrefetchScalarGridSpec(
        num_scalar_prefetch=0,
        grid=(B, nt),
        in_specs=[tile_spec,
                  pl.BlockSpec((1, 1, pad8, Cp), lambda b, t: (b, t, 0, 0)),
                  pl.BlockSpec((7, Cp, Cp), lambda b, t: (0, 0, 0)),
                  pl.BlockSpec((1, Cp), lambda b, t: (0, 0)),
                  pl.BlockSpec((Cp, Cp), lambda b, t: (0, 0)),
                  pl.BlockSpec((1, Cp), lambda b, t: (0, 0))],
        out_specs=tile_spec,
        scratch_shapes=[pltpu.VMEM((pad8 + tt, Cp), jnp.float32)],
    )

    ws = _working_set(tt)
    vmem_limit = int(min(max(int(ws * 1.5), 32 << 20), int(vmem_cap * 0.9)))

    wtotal = 8 * Cp * Cp * wbytes + 2 * Cp * 4
    flops = 2 * B * Tp * Cp * Cp * 8 + 4 * B * Tp * Cp
    bytes_accessed = 4 * (2 * B * Tp * Cp + B * nt * pad8 * Cp) + wtotal

    out = pl.pallas_call(
        kernel,
        out_shape=jax.ShapeDtypeStruct((B, Tp, Cp), jnp.float32),
        grid_spec=grid_spec,
        compiler_params=pltpu.CompilerParams(
            dimension_semantics=("parallel", "parallel"),
            vmem_limit_bytes=vmem_limit),
        cost_estimate=pl.CostEstimate(flops=int(flops),
                                      transcendentals=int(B * Tp * Cp),
                                      bytes_accessed=int(bytes_accessed)),
    )(x, tails, wc, bc, w1, b1)

    return jnp.transpose(out[:, :T, :C], (0, 2, 1))


def init_params(key, channels, dtype=jnp.float32):
    """Deterministic synthetic weights in the PyTorch layouts."""
    C = channels
    k = jax.random.split(key, 4)
    return {
        "wc": (0.1 * jax.random.normal(k[0], (C, C, 7))).astype(dtype),   # Conv1d (Cout, Cin, 7)
        "bc": (0.1 * jax.random.normal(k[1], (C,))).astype(dtype),
        "w1": (0.1 * jax.random.normal(k[2], (C, C, 1))).astype(dtype),   # Conv1d (Cout, Cin, 1)
        "b1": (0.1 * jax.random.normal(k[3], (C,))).astype(dtype),
    }


# --------------------------- pure-numpy reference ---------------------------
def _np_elu(x):
    return np.where(x > 0, x, np.expm1(np.minimum(x, 0.0)))


def _np_conv1d(x, w, b, dilation=1, pad_left=0):
    B, Cin, T = x.shape
    Cout, _, K = w.shape
    xp = np.pad(x, ((0, 0), (0, 0), (pad_left, 0)))
    Tout = xp.shape[2] - dilation * (K - 1)
    y = np.zeros((B, Cout, Tout))
    for j in range(K):
        y += np.einsum("bct,oc->bot",
                       xp[:, :, j * dilation:j * dilation + Tout], w[:, :, j])
    return y + b[None, :, None]


def ref_forward(x, params, dilation):
    wc = np.asarray(params["wc"], np.float64)
    bc = np.asarray(params["bc"], np.float64)
    w1 = np.asarray(params["w1"], np.float64)
    b1 = np.asarray(params["b1"], np.float64)
    r = _np_conv1d(x, wc, bc, dilation=dilation, pad_left=6 * dilation)
    r = _np_elu(r)
    r = _np_conv1d(r, w1, b1)
    return x + r


if __name__ == "__main__":
    B, C, T = 2, 4, 64
    key = jax.random.PRNGKey(0)
    for dilation in (1, 3, 9):
        kk = jax.random.fold_in(key, dilation)
        kx, kp = jax.random.split(kk)
        x = jax.random.normal(kx, (B, C, T), dtype=jnp.float32)
        params = init_params(kp, C)
        y_ref = ref_forward(np.asarray(x, np.float64), params, dilation)

        # t_tile=32 forces multi-tile + cross-tile-halo path at this small T
        # (for d=9 the 54-frame halo even spans multiple tiles).
        # f32 compute path: tight tolerance.
        y32 = soundstream_residual_unit(x, params, dilation=dilation,
                                        t_tile=32, compute_dtype=jnp.float32)
        y32 = jax.block_until_ready(y32)
        assert y32.shape == (B, C, T), y32.shape
        np.testing.assert_allclose(np.asarray(y32), y_ref, rtol=1e-4, atol=1e-4)

        # Default bf16-MXU-operand path: looser tolerance.
        ybf = soundstream_residual_unit(x, params, dilation=dilation, t_tile=32)
        ybf = jax.block_until_ready(ybf)
        np.testing.assert_allclose(np.asarray(ybf), y_ref, rtol=5e-2, atol=5e-2)
    print("KERNEL_OK")
</pallas_src>

<mosaic_0001>
module attributes {stable_mosaic.version = 11 : i64} {
  func.func @_residual_unit_kernel(%arg0: i32, %arg1: i32, %arg2: memref<1x32x128xf32, #tpu.memory_space<vmem>>, %arg3: memref<1x1x8x128xf32, #tpu.memory_space<vmem>>, %arg4: memref<7x128x128xf32, #tpu.memory_space<vmem>>, %arg5: memref<1x128xf32, #tpu.memory_space<vmem>>, %arg6: memref<128x128xf32, #tpu.memory_space<vmem>>, %arg7: memref<1x128xf32, #tpu.memory_space<vmem>>, %arg8: memref<1x32x128xf32, #tpu.memory_space<vmem>>, %arg9: memref<40x128xf32, #tpu.memory_space<vmem>>) attributes {dimension_semantics = [#tpu.dimension_semantics<parallel>, #tpu.dimension_semantics<parallel>], iteration_bounds = array<i64: 2, 2>, scalar_prefetch = 0 : i64, scratch_operands = 1 : i64, tpu.core_type = #tpu.core_type<tc>, window_params = [{transform_indices = @transform_0, window_bounds = array<i64: 1, 32, 128>}, {transform_indices = @transform_1, window_bounds = array<i64: 1, 1, 8, 128>}, {pipeline_mode = #tpu.pipeline_mode<synchronous>, transform_indices = @transform_2, window_bounds = array<i64: 7, 128, 128>}, {pipeline_mode = #tpu.pipeline_mode<synchronous>, transform_indices = @transform_3, window_bounds = array<i64: 1, 128>}, {pipeline_mode = #tpu.pipeline_mode<synchronous>, transform_indices = @transform_4, window_bounds = array<i64: 128, 128>}, {pipeline_mode = #tpu.pipeline_mode<synchronous>, transform_indices = @transform_5, window_bounds = array<i64: 1, 128>}, {transform_indices = @transform_6, window_bounds = array<i64: 1, 32, 128>}]} {
    %c0 = arith.constant 0 : index
    %c0_0 = arith.constant 0 : index
    %c0_1 = arith.constant 0 : index
    %c0_2 = arith.constant 0 : index
    %0 = vector.load %arg3[%c0, %c0_0, %c0_1, %c0_2] : memref<1x1x8x128xf32, #tpu.memory_space<vmem>>, vector<1x1x8x128xf32>
    %1 = vector.shape_cast %0 : vector<1x1x8x128xf32> to vector<8x128xf32>
    %c0_3 = arith.constant 0 : index
    %c0_4 = arith.constant 0 : index
    %2 = vector.load %arg9[%c0_3, %c0_4] : memref<40x128xf32, #tpu.memory_space<vmem>>, vector<8x128xf32>
    tpu.vector_store %arg9[%c0_3, %c0_4], %1 {strides = array<i32>} : memref<40x128xf32, #tpu.memory_space<vmem>>, vector<8x128xf32>,
    %c0_5 = arith.constant 0 : index
    %c0_6 = arith.constant 0 : index
    %c0_7 = arith.constant 0 : index
    %3 = vector.load %arg2[%c0_5, %c0_6, %c0_7] : memref<1x32x128xf32, #tpu.memory_space<vmem>>, vector<1x32x128xf32>
    %4 = vector.shape_cast %3 : vector<1x32x128xf32> to vector<32x128xf32>
    %c8 = arith.constant 8 : index
    %c0_8 = arith.constant 0 : index
    %5 = vector.load %arg9[%c8, %c0_8] : memref<40x128xf32, #tpu.memory_space<vmem>>, vector<32x128xf32>
    tpu.vector_store %arg9[%c8, %c0_8], %4 {strides = array<i32>} : memref<40x128xf32, #tpu.memory_space<vmem>>, vector<32x128xf32>,
    %c2 = arith.constant 2 : index
    %c0_9 = arith.constant 0 : index
    %6 = vector.load %arg9[%c2, %c0_9] : memref<40x128xf32, #tpu.memory_space<vmem>>, vector<32x128xf32>
    %c0_10 = arith.constant 0 : index
    %c0_11 = arith.constant 0 : index
    %c0_12 = arith.constant 0 : index
    %7 = vector.load %arg4[%c0_10, %c0_11, %c0_12] : memref<7x128x128xf32, #tpu.memory_space<vmem>>, vector<1x128x128xf32>
    %8 = vector.shape_cast %7 : vector<1x128x128xf32> to vector<128x128xf32>
    %cst = arith.constant dense<0.000000e+00> : vector<32x128xf32>
    %9 = tpu.matmul %6, %8, %cst {dimension_numbers = #tpu.dot_dimension_numbers<[1], [0], [0], [1], [0, 0, 1, 1], [], []>} : vector<32x128xf32>, vector<128x128xf32>, vector<32x128xf32> -> vector<32x128xf32>
    %c3 = arith.constant 3 : index
    %c0_13 = arith.constant 0 : index
    %10 = vector.load %arg9[%c3, %c0_13] : memref<40x128xf32, #tpu.memory_space<vmem>>, vector<32x128xf32>
    %c1 = arith.constant 1 : index
    %c0_14 = arith.constant 0 : index
    %c0_15 = arith.constant 0 : index
    %11 = vector.load %arg4[%c1, %c0_14, %c0_15] : memref<7x128x128xf32, #tpu.memory_space<vmem>>, vector<1x128x128xf32>
    %12 = vector.shape_cast %11 : vector<1x128x128xf32> to vector<128x128xf32>
    %cst_16 = arith.constant dense<0.000000e+00> : vector<32x128xf32>
    %13 = tpu.matmul %10, %12, %cst_16 {dimension_numbers = #tpu.dot_dimension_numbers<[1], [0], [0], [1], [0, 0, 1, 1], [], []>} : vector<32x128xf32>, vector<128x128xf32>, vector<32x128xf32> -> vector<32x128xf32>
    %14 = arith.addf %9, %13 : vector<32x128xf32>
    %c4 = arith.constant 4 : index
    %c0_17 = arith.constant 0 : index
    %15 = vector.load %arg9[%c4, %c0_17] : memref<40x128xf32, #tpu.memory_space<vmem>>, vector<32x128xf32>
    %c2_18 = arith.constant 2 : index
    %c0_19 = arith.constant 0 : index
    %c0_20 = arith.constant 0 : index
    %16 = vector.load %arg4[%c2_18, %c0_19, %c0_20] : memref<7x128x128xf32, #tpu.memory_space<vmem>>, vector<1x128x128xf32>
    %17 = vector.shape_cast %16 : vector<1x128x128xf32> to vector<128x128xf32>
    %cst_21 = arith.constant dense<0.000000e+00> : vector<32x128xf32>
    %18 = tpu.matmul %15, %17, %cst_21 {dimension_numbers = #tpu.dot_dimension_numbers<[1], [0], [0], [1], [0, 0, 1, 1], [], []>} : vector<32x128xf32>, vector<128x128xf32>, vector<32x128xf32> -> vector<32x128xf32>
    %19 = arith.addf %14, %18 : vector<32x128xf32>
    %c5 = arith.constant 5 : index
    %c0_22 = arith.constant 0 : index
    %20 = vector.load %arg9[%c5, %c0_22] : memref<40x128xf32, #tpu.memory_space<vmem>>, vector<32x128xf32>
    %c3_23 = arith.constant 3 : index
    %c0_24 = arith.constant 0 : index
    %c0_25 = arith.constant 0 : index
    %21 = vector.load %arg4[%c3_23, %c0_24, %c0_25] : memref<7x128x128xf32, #tpu.memory_space<vmem>>, vector<1x128x128xf32>
    %22 = vector.shape_cast %21 : vector<1x128x128xf32> to vector<128x128xf32>
    %cst_26 = arith.constant dense<0.000000e+00> : vector<32x128xf32>
    %23 = tpu.matmul %20, %22, %cst_26 {dimension_numbers = #tpu.dot_dimension_numbers<[1], [0], [0], [1], [0, 0, 1, 1], [], []>} : vector<32x128xf32>, vector<128x128xf32>, vector<32x128xf32> -> vector<32x128xf32>
    %24 = arith.addf %19, %23 : vector<32x128xf32>
    %c6 = arith.constant 6 : index
    %c0_27 = arith.constant 0 : index
    %25 = vector.load %arg9[%c6, %c0_27] : memref<40x128xf32, #tpu.memory_space<vmem>>, vector<32x128xf32>
    %c4_28 = arith.constant 4 : index
    %c0_29 = arith.constant 0 : index
    %c0_30 = arith.constant 0 : index
    %26 = vector.load %arg4[%c4_28, %c0_29, %c0_30] : memref<7x128x128xf32, #tpu.memory_space<vmem>>, vector<1x128x128xf32>
    %27 = vector.shape_cast %26 : vector<1x128x128xf32> to vector<128x128xf32>
    %cst_31 = arith.constant dense<0.000000e+00> : vector<32x128xf32>
    %28 = tpu.matmul %25, %27, %cst_31 {dimension_numbers = #tpu.dot_dimension_numbers<[1], [0], [0], [1], [0, 0, 1, 1], [], []>} : vector<32x128xf32>, vector<128x128xf32>, vector<32x128xf32> -> vector<32x128xf32>
    %29 = arith.addf %24, %28 : vector<32x128xf32>
    %c7 = arith.constant 7 : index
    %c0_32 = arith.constant 0 : index
    %30 = vector.load %arg9[%c7, %c0_32] : memref<40x128xf32, #tpu.memory_space<vmem>>, vector<32x128xf32>
    %c5_33 = arith.constant 5 : index
    %c0_34 = arith.constant 0 : index
    %c0_35 = arith.constant 0 : index
    %31 = vector.load %arg4[%c5_33, %c0_34, %c0_35] : memref<7x128x128xf32, #tpu.memory_space<vmem>>, vector<1x128x128xf32>
    %32 = vector.shape_cast %31 : vector<1x128x128xf32> to vector<128x128xf32>
    %cst_36 = arith.constant dense<0.000000e+00> : vector<32x128xf32>
    %33 = tpu.matmul %30, %32, %cst_36 {dimension_numbers = #tpu.dot_dimension_numbers<[1], [0], [0], [1], [0, 0, 1, 1], [], []>} : vector<32x128xf32>, vector<128x128xf32>, vector<32x128xf32> -> vector<32x128xf32>
    %34 = arith.addf %29, %33 : vector<32x128xf32>
    %c8_37 = arith.constant 8 : index
    %c0_38 = arith.constant 0 : index
    %35 = vector.load %arg9[%c8_37, %c0_38] : memref<40x128xf32, #tpu.memory_space<vmem>>, vector<32x128xf32>
    %c6_39 = arith.constant 6 : index
    %c0_40 = arith.constant 0 : index
    %c0_41 = arith.constant 0 : index
    %36 = vector.load %arg4[%c6_39, %c0_40, %c0_41] : memref<7x128x128xf32, #tpu.memory_space<vmem>>, vector<1x128x128xf32>
    %37 = vector.shape_cast %36 : vector<1x128x128xf32> to vector<128x128xf32>
    %cst_42 = arith.constant dense<0.000000e+00> : vector<32x128xf32>
    %38 = tpu.matmul %35, %37, %cst_42 {dimension_numbers = #tpu.dot_dimension_numbers<[1], [0], [0], [1], [0, 0, 1, 1], [], []>} : vector<32x128xf32>, vector<128x128xf32>, vector<32x128xf32> -> vector<32x128xf32>
    %39 = arith.addf %34, %38 : vector<32x128xf32>
    %c0_43 = arith.constant 0 : index
    %c0_44 = arith.constant 0 : index
    %40 = vector.load %arg5[%c0_43, %c0_44] : memref<1x128xf32, #tpu.memory_space<vmem>>, vector<1x128xf32>
    %41 = vector.broadcast %40 : vector<1x128xf32> to vector<32x128xf32>
    %42 = arith.addf %39, %41 : vector<32x128xf32>
    %cst_45 = arith.constant 0.000000e+00 : f32
    %43 = vector.broadcast %cst_45 : f32 to vector<32x128xf32>
    %44 = arith.cmpf ogt, %42, %43 : vector<32x128xf32>
    %cst_46 = arith.constant 0.000000e+00 : f32
    %45 = vector.broadcast %cst_46 : f32 to vector<32x128xf32>
    %46 = arith.minimumf %42, %45 : vector<32x128xf32>
    %47 = math.exp %46 : vector<32x128xf32>
    %cst_47 = arith.constant 1.000000e+00 : f32
    %48 = vector.broadcast %cst_47 : f32 to vector<32x128xf32>
    %49 = arith.subf %47, %48 : vector<32x128xf32>
    %50 = arith.select %44, %42, %49 : vector<32x128xi1>, vector<32x128xf32>
    %c0_48 = arith.constant 0 : index
    %c0_49 = arith.constant 0 : index
    %51 = vector.load %arg6[%c0_48, %c0_49] : memref<128x128xf32, #tpu.memory_space<vmem>>, vector<128x128xf32>
    %cst_50 = arith.constant dense<0.000000e+00> : vector<32x128xf32>
    %52 = tpu.matmul %50, %51, %cst_50 {dimension_numbers = #tpu.dot_dimension_numbers<[1], [0], [0], [1], [0, 0, 1, 1], [], []>} : vector<32x128xf32>, vector<128x128xf32>, vector<32x128xf32> -> vector<32x128xf32>
    %c0_51 = arith.constant 0 : index
    %c0_52 = arith.constant 0 : index
    %53 = vector.load %arg7[%c0_51, %c0_52] : memref<1x128xf32, #tpu.memory_space<vmem>>, vector<1x128xf32>
    %54 = vector.broadcast %53 : vector<1x128xf32> to vector<32x128xf32>
    %55 = arith.addf %52, %54 : vector<32x128xf32>
    %c8_53 = arith.constant 8 : index
    %c0_54 = arith.constant 0 : index
    %56 = vector.load %arg9[%c8_53, %c0_54] : memref<40x128xf32, #tpu.memory_space<vmem>>, vector<32x128xf32>
    %57 = arith.addf %56, %55 : vector<32x128xf32>
    %c0_55 = arith.constant 0 : index
    %c0_56 = arith.constant 0 : index
    %c0_57 = arith.constant 0 : index
    %58 = vector.load %arg8[%c0_55, %c0_56, %c0_57] : memref<1x32x128xf32, #tpu.memory_space<vmem>>, vector<1x32x128xf32>
    %59 = vector.shape_cast %58 : vector<1x32x128xf32> to vector<32x128xf32>
    %60 = vector.shape_cast %57 : vector<32x128xf32> to vector<1x32x128xf32>
    tpu.vector_store %arg8[%c0_55, %c0_56, %c0_57], %60 {strides = array<i32>} : memref<1x32x128xf32, #tpu.memory_space<vmem>>, vector<1x32x128xf32>,
    return
  }
  func.func @transform_0(%arg0: i32, %arg1: i32) -> (i32, i32, i32) {
    %c0_i32 = arith.constant 0 : i32
    %c0_i32_0 = arith.constant 0 : i32
    return %arg0, %arg1, %c0_i32 : i32, i32, i32
  }
  func.func @transform_1(%arg0: i32, %arg1: i32) -> (i32, i32, i32, i32) {
    %c0_i32 = arith.constant 0 : i32
    %c0_i32_0 = arith.constant 0 : i32
    %c0_i32_1 = arith.constant 0 : i32
    return %arg0, %arg1, %c0_i32, %c0_i32_0 : i32, i32, i32, i32
  }
  func.func @transform_2(%arg0: i32, %arg1: i32) -> (i32, i32, i32) {
    %c0_i32 = arith.constant 0 : i32
    %c0_i32_0 = arith.constant 0 : i32
    %c0_i32_1 = arith.constant 0 : i32
    %c0_i32_2 = arith.constant 0 : i32
    return %c0_i32, %c0_i32_0, %c0_i32_1 : i32, i32, i32
  }
  func.func @transform_3(%arg0: i32, %arg1: i32) -> (i32, i32) {
    %c0_i32 = arith.constant 0 : i32
    %c0_i32_0 = arith.constant 0 : i32
    %c0_i32_1 = arith.constant 0 : i32
    return %c0_i32, %c0_i32_0 : i32, i32
  }
  func.func @transform_4(%arg0: i32, %arg1: i32) -> (i32, i32) {
    %c0_i32 = arith.constant 0 : i32
    %c0_i32_0 = arith.constant 0 : i32
    %c0_i32_1 = arith.constant 0 : i32
    return %c0_i32, %c0_i32_0 : i32, i32
  }
  func.func @transform_5(%arg0: i32, %arg1: i32) -> (i32, i32) {
    %c0_i32 = arith.constant 0 : i32
    %c0_i32_0 = arith.constant 0 : i32
    %c0_i32_1 = arith.constant 0 : i32
    return %c0_i32, %c0_i32_0 : i32, i32
  }
  func.func @transform_6(%arg0: i32, %arg1: i32) -> (i32, i32, i32) {
    %c0_i32 = arith.constant 0 : i32
    %c0_i32_0 = arith.constant 0 : i32
    return %arg0, %arg1, %c0_i32 : i32, i32, i32
  }
}

</mosaic_0001>

<bundles_post_ra>
// kernel: tpu_custom_call.1
= control target key start
LH: loop header
LB: loop body
LE: loop exit
PB: predicated region body
PF: predicated region fallthrough
CT: control target
= control target key end

     0   :  { %s2959_s0 = inlined_call_operand.hbm [shape: f32[2,64,128], index: 0, kind: input, shape index: {}]   ;;  %s2960_s1 = inlined_call_operand.hbm [shape: f32[2,2,8,128], index: 1, kind: input, shape index: {}]   ;;  %s2961_s2 = inlined_call_operand.hbm [shape: f32[7,128,128], index: 2, kind: input, shape index: {}]   ;;  %s2962_s3 = inlined_call_operand.vmem [shape: f32[1,128], index: 3, kind: input, shape index: {}]   ;;  %s2963_s4 = inlined_call_operand.hbm [shape: f32[128,128], index: 4, kind: input, shape index: {}]   ;;  %s2964_s5 = inlined_call_operand.vmem [shape: f32[1,128], index: 5, kind: input, shape index: {}]   ;;  %s2965_s6 = inlined_call_operand.hbm [shape: f32[2,64,128], index: 6, kind: output, shape index: {}]  }
   0x1   :  { %2978 = sst [smem:[#allocation23_spill]] %s2959_s0 }
   0x2   :  { %2979 = sst [smem:[#allocation24_spill]] %s2961_s2 }
   0x3   :  { %2980 = sst [smem:[#allocation25_spill]] %s2963_s4 }
   0x4   :  { %2981 = sst [smem:[#allocation26_spill]] %s2964_s5 }
   0x5   :  { %2982 = sst [smem:[#allocation27_spill]] %s2965_s6 }
   0x6   :  { %11 = vsyncpa [#allocation4], 0 }
   0x7   :  { %13 = vsyncpa [#allocation4 + $0x1], 0 }
   0x8   :  { %14 = vsyncpa [#allocation7], 0 }
   0x9   :  { %16 = vsyncpa [#allocation7 + $0x1], 0 }
   0xa   :  { %17 = vsyncpa [#allocation10], 0 }
   0xb   :  { %18 = vsyncpa [#allocation5], 0 }
   0xc   :  { %20 = vsyncpa [#allocation5 + $0x1], 0  ;;  %s2595_s21 = smov 0   ;;  %s2597_s22 = smov 0  }
   0xd   :  { %s2599_s23 = smov 0   ;;  %s2601_s24 = smov 0  }
   0xe   :  { %s2603_s25 = smov 0   ;;  %s2605_s26 = smov 0  }
   0xf   :  { %s2607_s27 = smov 0   ;;  %s2609_s28 = smov 0  }
  0x10 LB: > { %2983 = sst [smem:[#allocation17_spill]] %s2521_s21  ;;  %s2636_s29 = sadd.s32 4294967295, %s2549_s28   ;;  %s2549_s28 = sphi %s2609_s28, %s26_s28   ;;  %s2545_s27 = sphi %s2607_s27, %s3024_s27   ;;  %s2541_s26 = sphi %s2605_s26, %s3023_s26   ;;  %s2537_s25 = sphi %s2603_s25, %s3022_s25   ;;  %s2533_s24 = sphi %s2601_s24, %s3021_s24   ;;  %s2529_s23 = sphi %s2599_s23, %s3020_s23   ;;  %s2525_s22 = sphi %s2597_s22, %s3019_s22   ;;  %s2521_s21 = sphi %s2595_s21, %s3018_s21  }
  0x11   : > { %s1433_s30 = sadd.s32 4294967294, %s2549_s28   ;;  %p60_p0 = scmp.ne.s32.totalorder %s2525_s22, %s2521_s21 }
  0x12   : > { %p2966_p1 = scmp.eq.s32.totalorder %s2636_s29, 0  ;;  %p204_p3 = scmp.eq.s32.totalorder %s1433_s30, 3 }
  0x13   : > { %p1434_p5 = scmp.ge.s32.totalorder %s2549_s28, 1  ;;  %p211_p7 = scmp.lt.s32.totalorder %s2549_s28, 5 }
  0x14   : > { %p2645_p4 = por %p2966_p1, %p60_p0  ;;  %p2650_p6 = por %p204_p3, %p60_p0 }
  0x15   : > { %p2655_p8 = pnand %p1434_p5, %p211_p7  ;;  %s2551_s10 = smov [#allocation8]  }
  0x16   : > { %s2984_s7 = scalar_select %p2645_p4, 1, 0 }
  0x17   : > { %s2985_s8 = scalar_select %p2650_p6, 1, 0 }
  0x18   : > { %s2987_s9 = scalar_select %p2655_p8, 1, 0 }
  0x19   : > { %2986 = sst [smem:[#allocation18_spill]] %s2985_s8  ;;  %s223_s11 = sshll.u32 %s2551_s10, 4  ;;  %s224_s11 = int_to_ptr.vmem [resolvable:$true] %s223_s11 }
  0x1a   : > { %p2221_p9 = pneg %p2655_p8  ;;  %s2552_s13 = smov [#allocation9]  }
  0x1b   : > { %s239_s14 = sshll.u32 %s2552_s13, 4  ;;  %s2989_s2 = sld [smem:[#allocation24_spill]]  ;;  %s2667_s14 = int_to_ptr.vmem [resolvable:$true] %s239_s14 }
  0x1c   : > { %p2663_p10 = pnand %p2221_p9, %p2966_p1 }
  0x1e   : > { %p2325_p12 = pneg %p2663_p10 }
  0x21   : > { %s2323_s17 = scalar_lea.hbm %s2989_s2, 14336 }
  0x22   : > { %p2324_p11 = scmp.ne.s32.totalorder %s2989_s2, %s2323_s17  ;;  %p2330_p3 = scmp.lt.u32.totalorder %s2323_s17, %s2989_s2 }
  0x24   : > { %p2326_p13 = pnand %p2325_p12, %p2324_p11 }
  0x26   : > { %p2327_p0 = pneg %p2326_p13 }
  0x28   : > { %p2332_p5 = pnand %p2330_p3, %p2327_p0 }
  0x2a   : > { %2335 = shalt.err (!%p2332_p5)
}
  0x2b   : > { %s2336_s10 = scalar_lea.vmem %s224_s11, 14336  ;;  %p2344_p2 = scmp.lt.s32.totalorder %s224_s11, %s224_s11 }
  0x2c   : > { %p2337_p7 = scmp.ne.s32.totalorder %s224_s11, %s2336_s10  ;;  %p2345_p6 = scmp.lt.s32.totalorder %s2336_s10, %s2336_s10 }
  0x2e   : > { %p2339_p9 = pnand %p2337_p7, %p2325_p12  ;;  %p2346_p4 = por %p2345_p6, %p2344_p2 }
  0x30   : > { %p2340_p1 = pneg %p2339_p9 }
  0x32   : > { %p2347_p8 = pnand %p2346_p4, %p2340_p1 }
  0x34   : > { %2350 = shalt.err (!%p2347_p8)
}
  0x35   : > { %s2971_s13 = smov 128   ;;  %s2972_s15 = smov 8  }
  0x36   : > { %2224 = dma.hbm_to_vmem [thread:$0]  (!%p2663_p10), %s2989_s2, 14336, %s224_s11, [#allocation7], %s2971_s13, %s2971_s13, %s2972_s15  }
  0x37   : > { %s2990_s4 = sld [smem:[#allocation25_spill]] }
  0x3d   : > { %s2351_s20 = scalar_lea.hbm %s2990_s4, 2048 }
  0x3e   : > { %p2352_p1 = scmp.ne.s32.totalorder %s2990_s4, %s2351_s20  ;;  %p2358_p6 = scmp.lt.u32.totalorder %s2351_s20, %s2990_s4 }
  0x40   : > { %p2354_p2 = pnand %p2352_p1, %p2325_p12 }
  0x42   : > { %p2355_p4 = pneg %p2354_p2 }
  0x44   : > { %p2360_p8 = pnand %p2358_p6, %p2355_p4 }
  0x46   : > { %2363 = shalt.err (!%p2360_p8)
}
  0x47   : > { %s2364_s11 = scalar_lea.vmem %s2667_s14, 2048  ;;  %p2372_p3 = scmp.lt.s32.totalorder %s2667_s14, %s2667_s14 }
  0x48   : > { %p2365_p11 = scmp.ne.s32.totalorder %s2667_s14, %s2364_s11  ;;  %p2373_p5 = scmp.lt.s32.totalorder %s2364_s11, %s2364_s11 }
  0x4a   : > { %p2367_p13 = pnand %p2365_p11, %p2325_p12  ;;  %p2374_p7 = por %p2373_p5, %p2372_p3 }
  0x4c   : > { %p2368_p0 = pneg %p2367_p13 }
  0x4e   : > { %p2375_p9 = pnand %p2374_p7, %p2368_p0 }
  0x50   : > { %2378 = shalt.err (!%p2375_p9)
}
  0x51   : > { %2227 = dma.hbm_to_vmem [thread:$0]  (!%p2663_p10), %s2990_s4, 2048, %s2667_s14, [#allocation10], %s2971_s13, %s2971_s13, %s2972_s15  }
  0x52   : > { %s35_s12 = sadd.s32 1, %s2541_s26  ;;  %s38_s16 = sadd.s32 1, %s2545_s27 }
  0x53   : > { %p36_p12 = scmp.ge.s32.totalorder %s35_s12, 2  ;;  %s47_s17 = sadd.s32 1, %s2529_s23 }
  0x54   : > { %p54_p1 = scmp.ne.s32.totalorder %s2529_s23, %s2525_s22  ;;  %p55_p2 = scmp.eq.s32.totalorder %s2549_s28, 0 }
  0x55   : > { %s3026_s12 = smov (%p36_p12, %s35_s12), 0  ;;  %s3028_s16 = smov (!%p36_p12, %s38_s16), %s2545_s27 }
  0x56   : > { %2991 = sst [smem:[#allocation19_spill]] %s3026_s12  ;;  %s43_s18 = ssub.s32 %s2541_s26, %s3026_s12 }
  0x57   : > { %p2733_p4 = por %p55_p2, %p54_p1  ;;  %p40_p10 = scmp.ge.s32.totalorder %s3028_s16, 2 }
  0x58   : > { %p2993_p6 = scmp.eq.s32.totalorder %s2636_s29, 3  ;;  %p2241_p11 = scmp.lt.s32.totalorder %s2549_s28, 4 }
  0x59   : > { %s2745_s20 = sand.u32 1, %s2529_s23   ;;  %s3030_s16 = smov (%p40_p10, %s3028_s16), 0 }
  0x5a   : > { %p2739_p8 = por %p2993_p6, %p54_p1  ;;  %2996 = sst [smem:[#allocation21_spill]] %s3030_s16 }
  0x5b   : > { %s1438_s30 = sshll.u32 %s2745_s20, 5  ;;  %s42_s10 = ssub.s32 %s2545_s27, %s3030_s16 }
  0x5c   : > { %s2994_s14 = scalar_select %p2739_p8, 1, 0 }
  0x5d   : > { %s44_s11 = sor.u32 %s43_s18, %s42_s10  ;;  %s1439_s21 = sshll.u32 %s2541_s26, 2 }
  0x5e   : > { %2995 = sst [smem:[#allocation20_spill]] %s2994_s14  ;;  %p45_p13 = scmp.eq.s32.totalorder %s44_s11, 0 }
  0x5f   : > { %s1440_s8 = sshll.u32 %s2545_s27, 3  ;;  %s260_s15 = scalar_lea.vmem [#allocation3], %s1438_s30 }
  0x60   : > { %s266_s13 = sadd.s32 %s1440_s8, %s1439_s21  ;;  %s269_s2 = sshll.u32 %s260_s15, 4  ;;  %s2757_s2 = int_to_ptr.vmem [resolvable:$true] %s269_s2 }
  0x61   : > { %s2755_s4 = scalar_select %p45_p13, %s2529_s23, %s47_s17  }
  0x62   : > { %s1441_s12 = sshll.u32 %s266_s13, 7  ;;  %s2998_s0 = sld [smem:[#allocation23_spill]] }
  0x63   : > { %2997 = sst [smem:[#allocation22_spill]] %s2755_s4  ;;  %p2768_p0 = pnand %p2241_p11, %p2733_p4 }
  0x64   : > { %s1442_s15 = sshll.u32 %s2745_s20, 3  ;;  %s257_s17 = scalar_lea.sflag [#allocation4], %s2745_s20 }
  0x65   : > { %p2381_p5 = pneg %p2768_p0 }
  0x68   : > { %s2762_s5 = scalar_lea.hbm %s2998_s0, %s1441_s12  ;;  %s2384_s19 = scalar_lea.hbm %s2998_s0, 2048 }
  0x69   : > { %s2379_s30 = scalar_lea.hbm %s2762_s5, 512  ;;  %p2385_p12 = scmp.lt.u32.totalorder %s2762_s5, %s2998_s0 }
  0x6a   : > { %p2380_p3 = scmp.ne.s32.totalorder %s2762_s5, %s2379_s30  ;;  %p2386_p1 = scmp.lt.u32.totalorder %s2384_s19, %s2379_s30 }
  0x6b   : > { %p2388_p4 = scmp.lt.u32.totalorder %s2379_s30, %s2762_s5 }
  0x6c   : > { %p2382_p7 = pnand %p2381_p5, %p2380_p3  ;;  %p2387_p2 = por %p2386_p1, %p2385_p12 }
  0x6e   : > { %p2383_p9 = pneg %p2382_p7  ;;  %p2389_p10 = por %p2388_p4, %p2387_p2 }
  0x70   : > { %p2390_p6 = pnand %p2389_p10, %p2383_p9 }
  0x72   : > { %2393 = shalt.err (!%p2390_p6)
}
  0x73   : > { %s2394_s11 = scalar_lea.vmem %s2757_s2, 512  ;;  %s2555_s21 = smov [#allocation3]  }
  0x74   : > { %p2395_p11 = scmp.ne.s32.totalorder %s2757_s2, %s2394_s11  ;;  %s2399_s8 = sshll.u32 %s2555_s21, 4  ;;  %s2400_s8 = int_to_ptr.vmem [resolvable:$false] %s2399_s8 }
  0x75   : > { %s2401_s6 = scalar_lea.vmem %s2400_s8, 1024  ;;  %p2402_p7 = scmp.lt.s32.totalorder %s2757_s2, %s2400_s8 }
  0x76   : > { %p2397_p13 = pnand %p2395_p11, %p2381_p5  ;;  %p2403_p12 = scmp.lt.s32.totalorder %s2401_s6, %s2394_s11 }
  0x78   : > { %p2398_p3 = pneg %p2397_p13  ;;  %p2404_p1 = por %p2403_p12, %p2402_p7 }
  0x7a   : > { %p2405_p2 = pnand %p2404_p1, %p2398_p3 }
  0x7c   : > { %2408 = shalt.err (!%p2405_p2)
}
  0x7d   : > { %s3000_s30 = smov 8   ;;  %s3001_s12 = smov 128  }
  0x7e   : > { %2231 = dma.hbm_to_vmem [thread:$0]  (!%p2768_p0), %s2762_s5, 512, %s2757_s2, %s257_s17, %s3001_s12, %s3001_s12, %s3000_s30  }
  0x7f   : > { %s1443_s19 = sshll.u32 %s2545_s27, 1  ;;  %s283_s10 = scalar_lea.vmem [#allocation6], %s1442_s15 }
  0x80   : > { %s288_s14 = sadd.s32 %s2541_s26, %s1443_s19  ;;  %s292_s11 = sshll.u32 %s283_s10, 4  ;;  %s2809_s11 = int_to_ptr.vmem [resolvable:$true] %s292_s11 }
  0x81   : > { %s1444_s21 = sshll.u32 %s288_s14, 7  ;;  %s3002_s0 = sand.u32 1, %s2549_s28  }
  0x82   : > { %s290_s13 = scalar_lea.hbm %s2960_s1, %s1444_s21  ;;  %s280_s16 = scalar_lea.sflag [#allocation7], %s3002_s0 }
  0x83   : > { %s2409_s4 = scalar_lea.hbm %s290_s13, 128  ;;  %s2414_s20 = scalar_lea.hbm %s2960_s1, 512 }
  0x84   : > { %p2410_p9 = scmp.ne.s32.totalorder %s290_s13, %s2409_s4  ;;  %p2415_p6 = scmp.lt.u32.totalorder %s290_s13, %s2960_s1 }
  0x85   : > { %p2416_p11 = scmp.lt.u32.totalorder %s2414_s20, %s2409_s4  ;;  %p2418_p3 = scmp.lt.u32.totalorder %s2409_s4, %s290_s13 }
  0x86   : > { %p2412_p4 = pnand %p2410_p9, %p2381_p5 }
  0x87   : > { %p2417_p13 = por %p2416_p11, %p2415_p6 }
  0x88   : > { %p2413_p10 = pneg %p2412_p4 }
  0x89   : > { %p2419_p7 = por %p2418_p3, %p2417_p13 }
  0x8b   : > { %p2420_p12 = pnand %p2419_p7, %p2413_p10 }
  0x8d   : > { %2423 = shalt.err (!%p2420_p12)
}
  0x8e   : > { %s2424_s0 = scalar_lea.vmem %s2809_s11, 128  ;;  %s2556_s30 = smov [#allocation6]  }
  0x8f   : > { %p2425_p1 = scmp.ne.s32.totalorder %s2809_s11, %s2424_s0  ;;  %s2429_s12 = sshll.u32 %s2556_s30, 4  ;;  %s2430_s12 = int_to_ptr.vmem [resolvable:$false] %s2429_s12 }
  0x90   : > { %s2431_s19 = scalar_lea.vmem %s2430_s12, 256  ;;  %p2432_p4 = scmp.lt.s32.totalorder %s2809_s11, %s2430_s12 }
  0x91   : > { %p2427_p2 = pnand %p2425_p1, %p2381_p5  ;;  %p2433_p6 = scmp.lt.s32.totalorder %s2431_s19, %s2424_s0 }
  0x93   : > { %p2428_p9 = pneg %p2427_p2  ;;  %p2434_p11 = por %p2433_p6, %p2432_p4 }
  0x95   : > { %p2435_p13 = pnand %p2434_p11, %p2428_p9 }
  0x97   : > { %2438 = shalt.err (!%p2435_p13)
}
  0x98   : > { %2234 = dma.hbm_to_vmem [thread:$0]  (!%p2768_p0), %s290_s13, 128, %s2809_s11, %s280_s16  }
  0x99   : > { %p3003_p10 = scmp.ne.s32.totalorder %s2987_s9, 0 }
  0x9a   : > { %s2837_s4 = sand.u32 (!%p3003_p10), 1, %s2525_s22   ;;  %p3004_p5 = scmp.ne.s32.totalorder (!%p3003_p10), %s2984_s7, 0 }
  0x9b   : > { %301 = sbr.rel (%p3003_p10) target bundleno = 776 (0x308), region = 44  ;;  %s1446_s14 = sshll.u32 (!%p3003_p10), %s2837_s4, 5 }
  0x9c   : > { %s304_s10 = scalar_lea.sflag (!%p3003_p10), [#allocation4], %s2837_s4  ;;  %s2843_s21 = scalar_lea.vmem (!%p3003_p10), [#allocation3], %s1446_s14 }
  0xa2   : > { %2500 = dma.done.wait (%p3004_p5), %s304_s10, 512  }
  0xa3   : > { %2502 = vsyncadd (%p3004_p5), %s304_s10, 4294966784  ;;  %s312_s9 = sand.u32 1, %s2636_s29   ;;  %s1447_s16 = sshll.u32 %s2837_s4, 3 }
  0xa4   : > { %s313_s18 = scalar_lea.sflag [#allocation7], %s312_s9  ;;  %s2851_s13 = scalar_lea.vmem [#allocation6], %s1447_s16 }
  0xa5   : > { %2504 = dma.done.wait (%p3004_p5), %s313_s18, 128  }
  0xa6   : > { %2506 = vsyncadd (%p3004_p5), %s313_s18, 4294967168  ;;  %p3005_p0 = scmp.eq.s32.totalorder %s2636_s29, 0 }
  0xa8   : > { %2508 = dma.done.wait (%p3005_p0), [#allocation7], 14336   ;;  %p3006_p3 = pmov %p3005_p0 }
  0xa9   : > { %p3007_p7 = pmov %p3005_p0 }
  0xaa   : > { %2510 = vsyncadd (%p3006_p3), [#allocation7], 4294952960 }
  0xab   : > { %2512 = dma.done.wait (%p3007_p7), [#allocation10], 2048   ;;  %p3008_p12 = pmov %p3005_p0 }
  0xac   : > { %v395_v0 = vld [vmem:[#allocation8 + $0x80] sm:$0xff]  ;;  %v396_v1 = vld [vmem:[#allocation8 + $0x88] sm:$0xff]  ;;  %v397_v5 = vld [vmem:[#allocation8 + $0x90] sm:$0xff]  ;;  %s3009_s6 = sld [smem:[#allocation26_spill]]  ;;  %s1458_s2 = sshll.u32 %s2533_s24, 2 }
  0xad   : > { %2514 = vsyncadd (%p3008_p12), [#allocation10], 4294965248  ;;  %v696_v2 = vld [vmem:[#allocation8 + $0x180] sm:$0xff]  ;;  %v1927_v3 = vpack.c.bf16 %v396_v1, %v395_v0  ;;  %v697_v4 = vld [vmem:[#allocation8 + $0x188] sm:$0xff]  ;;  %s1459_s5 = sshll.u32 %s2537_s25, 3  ;;  %s357_s15 = scalar_lea.vmem [#allocation11], %s1446_s14 }
  0xae   : > { %v398_v6 = vld [vmem:[#allocation8 + $0x98] sm:$0xff]  ;;  %v2023_v7 = vpack.c.bf16 %v697_v4, %v696_v2  ;;  %v698_v9 = vld [vmem:[#allocation8 + $0x190] sm:$0xff]  ;;  %v399_v11 = vld [vmem:[#allocation8 + $0xa0] sm:$0xff]  ;;  %s1295_s20 = sadd.s32 %s1459_s5, %s1458_s2  ;;  %s1298_s17 = sshll.u32 %s357_s15, 4  ;;  %s2898_s17 = int_to_ptr.vmem [resolvable:$true] %s1298_s17 }
  0xaf   : > { %v1931_v8 = vpack.c.bf16 %v398_v6, %v397_v5  ;;  %v699_v10 = vld [vmem:[#allocation8 + $0x198] sm:$0xff]  ;;  %1928 = vmatprep.subr.bf16.mxu1 %v1927_v3  ;;  %v400_v13 = vld [vmem:[#allocation8 + $0xa8] sm:$0xff]  ;;  %v700_v14 = vld [vmem:[#allocation8 + $0x1a0] sm:$0xff]  ;;  %s1460_s30 = sshll.u32 %s1295_s20, 7  ;;  %s3011_s12 = sld [smem:[#allocation27_spill]] }
  0xb0   : > { %v2027_v12 = vpack.c.bf16 %v699_v10, %v698_v9  ;;  %v701_v15 = vld [vmem:[#allocation8 + $0x1a8] sm:$0xff]  ;;  %2024 = vmatprep.subr.bf16.mxu0 %v2023_v7  ;;  %1930 = vmatpush3.bf16.msra.mxu1 %v1927_v3  ;;  %v1935_v16 = vpack.c.bf16 %v400_v13, %v399_v11  ;;  %v401_v18 = vld [vmem:[#allocation8 + $0xb0] sm:$0xff]  ;;  %v402_v19 = vld [vmem:[#allocation8 + $0xb8] sm:$0xff]  ;;  %s1283_s14 = scalar_lea.sflag [#allocation5], %s2837_s4  ;;  %s2439_s10 = scalar_lea.vmem %s2898_s17, 512 }
  0xb1   : > { %2026 = vmatpush3.bf16.msra.mxu0 %v2023_v7  ;;  %1932 = vmatprep.subr.bf16.mxu1 %v1931_v8  ;;  %v2031_v17 = vpack.c.bf16 %v701_v15, %v700_v14  ;;  %v702_v20 = vld [vmem:[#allocation8 + $0x1b0] sm:$0xff]  ;;  %v703_v21 = vld [vmem:[#allocation8 + $0x1b8] sm:$0xff]  ;;  %v1939_v22 = vpack.c.bf16 %v402_v19, %v401_v18  ;;  %v403_v24 = vld [vmem:[#allocation8 + $0xc0] sm:$0xff]  ;;  %p2440_p1 = scmp.ne.s32.totalorder %s2898_s17, %s2439_s10 }
  0xb2   : > { %2028 = vmatprep.subr.bf16.mxu0 %v2027_v12  ;;  %v2035_v23 = vpack.c.bf16 %v703_v21, %v702_v20  ;;  %v404_v25 = vld [vmem:[#allocation8 + $0xc8] sm:$0xff]  ;;  %v360_v26 = vld [vmem:[%s2851_s13] sm:$0xff]  ;;  %v704_v27 = vld [vmem:[#allocation8 + $0x1c0] sm:$0xff] }
  0xb3   : > { %v705_v28 = vld [vmem:[#allocation8 + $0x1c8] sm:$0xff]  ;;  %361 = vst [vmem:[#allocation2] sm:$0xff] %v360_v26  ;;  %v2867_v29 = vld [vmem:[%s2843_s21] sm:$0xff]  ;;  %v2871_v30 = vld [vmem:[%s2843_s21 + $0x8] sm:$0xff]  ;;  %v1943_v31 = vpack.c.bf16 %v404_v25, %v403_v24  ;;  %p2441_p2 = pnand %p2440_p1, %p2739_p8 }
  0xb4   : > { %1934 = vmatpush3.bf16.msra.mxu1 %v1931_v8  ;;  %366 = vst [vmem:[#allocation2 + $0x8] sm:$0xff] %v2867_v29  ;;  %367 = vst [vmem:[#allocation2 + $0x10] sm:$0xff] %v2871_v30  ;;  %v2039_v32 = vpack.c.bf16 %v705_v28, %v704_v27  ;;  %v405_v33 = vld [vmem:[#allocation8 + $0xd0] sm:$0xff]  ;;  %v406_v34 = vld [vmem:[#allocation8 + $0xd8] sm:$0xff] }
  0xb5   : > { %2030 = vmatpush3.bf16.msra.mxu0 %v2027_v12  ;;  %1936 = vmatprep.subr.bf16.mxu1 %v1935_v16  ;;  %v706_v35 = vld [vmem:[#allocation8 + $0x1d0] sm:$0xff]  ;;  %v707_v36 = vld [vmem:[#allocation8 + $0x1d8] sm:$0xff]  ;;  %v1947_v37 = vpack.c.bf16 %v406_v34, %v405_v33  ;;  %v407_v39 = vld [vmem:[#allocation8 + $0xe0] sm:$0xff]  ;;  %s2904_s19 = scalar_lea.hbm %s3011_s12, %s1460_s30  ;;  %p2442_p9 = pneg %p2441_p2 }
  0xb6   : > { %2032 = vmatprep.subr.bf16.mxu0 %v2031_v17  ;;  %v2043_v38 = vpack.c.bf16 %v707_v36, %v706_v35  ;;  %v408_v40 = vld [vmem:[#allocation8 + $0xe8] sm:$0xff]  ;;  %v708_v41 = vld [vmem:[#allocation8 + $0x1e0] sm:$0xff]  ;;  %v409_v47 = vld [vmem:[#allocation8 + $0xf0] sm:$0xff] }
  0xb7   : > { %v709_v42 = vld [vmem:[#allocation8 + $0x1e8] sm:$0xff]  ;;  %v1951_v45 = vpack.c.bf16 %v408_v40, %v407_v39  ;;  %v410_v48 = vld [vmem:[#allocation8 + $0xf8] sm:$0xff]  ;;  %v2875_v49 = vld [vmem:[%s2843_s21 + $0x10] sm:$0xff] }
  0xb8   : > { %1938 = vmatpush3.bf16.msra.mxu1 %v1935_v16  ;;  %v2047_v46 = vpack.c.bf16 %v709_v42, %v708_v41  ;;  %v710_v50 = vld [vmem:[#allocation8 + $0x1f0] sm:$0xff]  ;;  %v711_v51 = vld [vmem:[#allocation8 + $0x1f8] sm:$0xff]  ;;  %368 = vst [vmem:[#allocation2 + $0x18] sm:$0xff] %v2875_v49  ;;  %v2879_v52 = vld [vmem:[%s2843_s21 + $0x18] sm:$0xff]  ;;  %v1955_v53 = vpack.c.bf16 %v410_v48, %v409_v47  ;;  %s2557_s21 = smov [#allocation11]  }
  0xb9   : > { %2034 = vmatpush3.bf16.msra.mxu0 %v2031_v17  ;;  %1940 = vmatprep.subr.bf16.mxu1 %v1939_v22  ;;  %369 = vst [vmem:[#allocation2 + $0x20] sm:$0xff] %v2879_v52  ;;  %v2051_v54 = vpack.c.bf16 %v711_v51, %v710_v50  ;;  %v374_v55 = vld [vmem:[#allocation8] sm:$0xff]  ;;  %v375_v56 = vld [vmem:[#allocation8 + $0x8] sm:$0xff]  ;;  %v376_v61 = vld [vmem:[#allocation8 + $0x10] sm:$0xff]  ;;  %s2443_s9 = sshll.u32 %s2557_s21, 4  ;;  %s2444_s9 = int_to_ptr.vmem [resolvable:$false] %s2443_s9 }
  0xba   : > { %2036 = vmatprep.subr.bf16.mxu0 %v2035_v23  ;;  %v806_v57 = vld [vmem:[#allocation8 + $0x200] sm:$0xff]  ;;  %v807_v58 = vld [vmem:[#allocation8 + $0x208] sm:$0xff]  ;;  %v1959_v59 = vpack.c.bf16 %v375_v56, %v374_v55  ;;  %v377_v62 = vld [vmem:[#allocation8 + $0x18] sm:$0xff]  ;;  %s2445_s16 = scalar_lea.vmem %s2444_s9, 1024  ;;  %p2446_p4 = scmp.lt.s32.totalorder %s2898_s17, %s2444_s9 }
  0xbb   : > { %v390_v43 = vld [vmem:[#allocation2 + $0x3] sm:$0xff]  ;;  %v2055_v60 = vpack.c.bf16 %v807_v58, %v806_v57  ;;  %v809_v0 = vld [vmem:[#allocation8 + $0x218] sm:$0xff]  ;;  %v1963_v3 = vpack.c.bf16 %v377_v62, %v376_v61  ;;  %v378_v5 = vld [vmem:[#allocation8 + $0x20] sm:$0xff]  ;;  %p2447_p6 = scmp.lt.s32.totalorder %s2445_s16, %s2439_s10 }
  0xbc   : > { %1942 = vmatpush3.bf16.msra.mxu1 %v1939_v22  ;;  %v691_v44 = vld [vmem:[#allocation2 + $0x5] sm:$0xff]  ;;  %1655 = vmatprep.mubr.f32.mxu1 %v390_v43  ;;  %v692_v2 = vld [vmem:[#allocation2 + $0xd] sm:$0xff]  ;;  %v810_v7 = vld [vmem:[#allocation8 + $0x220] sm:$0xff] }
  0xbd   : > { %2038 = vmatpush3.bf16.msra.mxu0 %v2035_v23  ;;  %1944 = vmatprep.subr.bf16.mxu1 %v1943_v31  ;;  %v808_v63 = vld [vmem:[#allocation8 + $0x210] sm:$0xff]  ;;  %v379_v6 = vld [vmem:[#allocation8 + $0x28] sm:$0xff]  ;;  %v381_v16 = vld [vmem:[#allocation8 + $0x38] sm:$0xff]  ;;  %p2448_p11 = por %p2447_p6, %p2446_p4 }
  0xbe   : > { %2040 = vmatprep.subr.bf16.mxu0 %v2039_v32  ;;  %1769 = vmatprep.mubr.f32.mxu0 %v691_v44  ;;  %v391_v1 = vld [vmem:[#allocation2 + $0xb] sm:$0xff]  ;;  %v2059_v4 = vpack.c.bf16 %v809_v0, %v808_v63  ;;  %v811_v8 = vld [vmem:[#allocation8 + $0x228] sm:$0xff]  ;;  %v1967_v12 = vpack.c.bf16 %v379_v6, %v378_v5  ;;  %v382_v23 = vld [vmem:[#allocation8 + $0x40] sm:$0xff] }
  0xbf   : > { %v392_v9 = vld [vmem:[#allocation2 + $0x13] sm:$0xff]  ;;  %v2063_v14 = vpack.c.bf16 %v811_v8, %v810_v7  ;;  %v380_v15 = vld [vmem:[#allocation8 + $0x30] sm:$0xff]  ;;  %v383_v24 = vld [vmem:[#allocation8 + $0x48] sm:$0xff]  ;;  %p2449_p13 = pnand %p2448_p11, %p2442_p9 }
  0xc0   : > { %1946 = vmatpush3.bf16.msra.mxu1 %v1943_v31  ;;  %v693_v10 = vld [vmem:[#allocation2 + $0x15] sm:$0xff]  ;;  %v694_v13 = vld [vmem:[#allocation2 + $0x1d] sm:$0xff]  ;;  %v812_v17 = vld [vmem:[#allocation8 + $0x230] sm:$0xff]  ;;  %v1971_v21 = vpack.c.bf16 %v381_v16, %v380_v15  ;;  %v1975_v27 = vpack.c.bf16 %v383_v24, %v382_v23 }
  0xc1   : > { %2042 = vmatpush3.bf16.msra.mxu0 %v2039_v32  ;;  %1948 = vmatprep.subr.bf16.mxu1 %v1947_v37  ;;  %v393_v11 = vld [vmem:[#allocation2 + $0x1b] sm:$0xff]  ;;  %v813_v18 = vld [vmem:[#allocation8 + $0x238] sm:$0xff]  ;;  %v801_v20 = vld [vmem:[#allocation2 + $0x6] sm:$0xff] }
  0xc2   : > { %2044 = vmatprep.subr.bf16.mxu0 %v2043_v38  ;;  %v370_v19 = vld [vmem:[#allocation2 + $0x2] sm:$0xff]  ;;  %v2067_v22 = vpack.c.bf16 %v813_v18, %v812_v17  ;;  %v814_v25 = vld [vmem:[#allocation8 + $0x240] sm:$0xff]  ;;  %v385_v32 = vld [vmem:[#allocation8 + $0x58] sm:$0xff] }
  0xc3   : > { %v815_v26 = vld [vmem:[#allocation8 + $0x248] sm:$0xff]  ;;  %v384_v31 = vld [vmem:[#allocation8 + $0x50] sm:$0xff]  ;;  %v817_v34 = vld [vmem:[#allocation8 + $0x258] sm:$0xff] }
  0xc4   : > { %1950 = vmatpush3.bf16.msra.mxu1 %v1947_v37  ;;  %v2071_v28 = vpack.c.bf16 %v815_v26, %v814_v25  ;;  %v816_v33 = vld [vmem:[#allocation8 + $0x250] sm:$0xff]  ;;  %v1979_v35 = vpack.c.bf16 %v385_v32, %v384_v31  ;;  %v386_v37 = vld [vmem:[#allocation8 + $0x60] sm:$0xff]  ;;  %v819_v40 = vld [vmem:[#allocation8 + $0x268] sm:$0xff] }
  0xc5   : > { %2046 = vmatpush3.bf16.msra.mxu0 %v2043_v38  ;;  %1952 = vmatprep.subr.bf16.mxu1 %v1951_v45  ;;  %v2075_v36 = vpack.c.bf16 %v817_v34, %v816_v33  ;;  %v387_v38 = vld [vmem:[#allocation8 + $0x68] sm:$0xff]  ;;  %v818_v39 = vld [vmem:[#allocation8 + $0x260] sm:$0xff]  ;;  %v388_v43 = vld [vmem:[#allocation8 + $0x70] sm:$0xff] }
  0xc6   : > { %2048 = vmatprep.subr.bf16.mxu0 %v2047_v46  ;;  %v1983_v41 = vpack.c.bf16 %v387_v38, %v386_v37  ;;  %v2079_v42 = vpack.c.bf16 %v819_v40, %v818_v39  ;;  %v389_v44 = vld [vmem:[#allocation8 + $0x78] sm:$0xff]  ;;  %v586_v50 = vld [vmem:[#allocation8 + $0x100] sm:$0xff]  ;;  %v587_v51 = vld [vmem:[#allocation8 + $0x108] sm:$0xff] }
  0xc7   : > { %v1987_v47 = vpack.c.bf16 %v389_v44, %v388_v43  ;;  %v1991_v55 = vpack.c.bf16 %v587_v51, %v586_v50  ;;  %v588_v57 = vld [vmem:[#allocation8 + $0x110] sm:$0xff]  ;;  %v589_v58 = vld [vmem:[#allocation8 + $0x118] sm:$0xff]  ;;  %v373_v6 = vld [vmem:[#allocation2 + $0x1a] sm:$0xff] }
  0xc8   : > { %1954 = vmatpush3.bf16.msra.mxu1 %v1951_v45  ;;  %v820_v45 = vld [vmem:[#allocation8 + $0x270] sm:$0xff]  ;;  %v1995_v63 = vpack.c.bf16 %v589_v58, %v588_v57  ;;  %v372_v5 = vld [vmem:[#allocation2 + $0x12] sm:$0xff]  ;;  %v599_v34 = vld [vmem:[#allocation8 + $0x168] sm:$0xff] }
  0xc9   : > { %2050 = vmatpush3.bf16.msra.mxu0 %v2047_v46  ;;  %1956 = vmatprep.subr.bf16.mxu1 %v1955_v53  ;;  %v821_v46 = vld [vmem:[#allocation8 + $0x278] sm:$0xff]  ;;  %v581_v15 = vld [vmem:[#allocation2 + $0x4] sm:$0xff]  ;;  %v598_v33 = vld [vmem:[#allocation8 + $0x160] sm:$0xff] }
  0xca   : > { %2052 = vmatprep.subr.bf16.mxu0 %v2051_v54  ;;  %v2083_v48 = vpack.c.bf16 %v821_v46, %v820_v45  ;;  %v371_v61 = vld [vmem:[#allocation2 + $0xa] sm:$0xff]  ;;  %v803_v7 = vld [vmem:[#allocation2 + $0x16] sm:$0xff]  ;;  %v2015_v37 = vpack.c.bf16 %v599_v34, %v598_v33  ;;  %v1027_v46 = vld [vmem:[#allocation8 + $0x308] sm:$0xff] }
  0xcb   : > { %v802_v62 = vld [vmem:[#allocation2 + $0xe] sm:$0xff]  ;;  %v1026_v45 = vld [vmem:[#allocation8 + $0x300] sm:$0xff]  ;;  %v1031_v58 = vld [vmem:[#allocation8 + $0x328] sm:$0xff] }
  0xcc   : > { %1958 = vmatpush3.bf16.msra.mxu1 %v1955_v53  ;;  %v916_v53 = vld [vmem:[#allocation8 + $0x280] sm:$0xff]  ;;  %v911_v16 = vld [vmem:[#allocation2 + $0x7] sm:$0xff]  ;;  %v597_v26 = vld [vmem:[#allocation8 + $0x158] sm:$0xff] }
  0xcd   : > { %2054 = vmatpush3.bf16.msra.mxu0 %v2051_v54  ;;  %1960 = vmatprep.subr.bf16.mxu1 %v1959_v59  ;;  %v917_v54 = vld [vmem:[#allocation8 + $0x288] sm:$0xff]  ;;  %v596_v25 = vld [vmem:[#allocation8 + $0x150] sm:$0xff]  ;;  %v601_v40 = vld [vmem:[#allocation8 + $0x178] sm:$0xff] }
  0xce   : > { %2056 = vmatprep.subr.bf16.mxu0 %v2055_v60  ;;  %v2087_v56 = vpack.c.bf16 %v917_v54, %v916_v53  ;;  %v2011_v31 = vpack.c.bf16 %v597_v26, %v596_v25  ;;  %v600_v39 = vld [vmem:[#allocation8 + $0x170] sm:$0xff]  ;;  %v1029_v50 = vld [vmem:[#allocation8 + $0x318] sm:$0xff]  ;;  %v1030_v57 = vld [vmem:[#allocation8 + $0x320] sm:$0xff] }
  0xcf   : > { %1656 = vmatmul.mubr.f32.vlgmr.msra.gmra.mrb[0].mxu1 %v391_v1  ;;  %v590_v1 = vld [vmem:[#allocation8 + $0x120] sm:$0xff]  ;;  %v2019_v43 = vpack.c.bf16 %v601_v40, %v600_v39  ;;  %v582_v51 = vld [vmem:[#allocation2 + $0xc] sm:$0xff]  ;;  %v1175_v26 = vld [vmem:[#allocation9 + $0x48] sm:$0xff] }
  0xd0   : > { %1962 = vmatpush3.bf16.msra.mxu1 %v1959_v59  ;;  %1770 = vmatmul.mubr.f32.vlgmr.msra.gmra.mrb[0].mxu0 %v692_v2  ;;  %v918_v59 = vld [vmem:[#allocation8 + $0x290] sm:$0xff]  ;;  %v591_v2 = vld [vmem:[#allocation8 + $0x128] sm:$0xff]  ;;  %v583_v54 = vld [vmem:[#allocation2 + $0x14] sm:$0xff] }
  0xd1   : > { %2058 = vmatpush3.bf16.msra.mxu0 %v2055_v60  ;;  %1964 = vmatprep.subr.bf16.mxu1 %v1963_v3  ;;  %v919_v60 = vld [vmem:[#allocation8 + $0x298] sm:$0xff]  ;;  %v1999_v8 = vpack.c.bf16 %v591_v2, %v590_v1  ;;  %v1034_v1 = vld [vmem:[#allocation8 + $0x340] sm:$0xff]  ;;  %v1035_v2 = vld [vmem:[#allocation8 + $0x348] sm:$0xff] }
  0xd2   : > { %2060 = vmatprep.subr.bf16.mxu0 %v2059_v4  ;;  %1658 = vmatprep.mubr.f32.mxu1 %v392_v9  ;;  %v2091_v0 = vpack.c.bf16 %v919_v60, %v918_v59  ;;  %v804_v9 = vld [vmem:[#allocation2 + $0x1e] sm:$0xff]  ;;  %v912_v53 = vld [vmem:[#allocation2 + $0xf] sm:$0xff] }
  0xd3   : > { %1772 = vmatprep.mubr.f32.mxu0 %v693_v10  ;;  %1659 = vmatmul.mubr.f32.gmra.mrb[2].mxu1 %v393_v11  ;;  %v592_v11 = vld [vmem:[#allocation8 + $0x130] sm:$0xff]  ;;  %v584_v59 = vld [vmem:[#allocation2 + $0x1c] sm:$0xff] }
  0xd4   : > { %1966 = vmatpush3.bf16.msra.mxu1 %v1963_v3  ;;  %1773 = vmatmul.mubr.f32.gmra.mrb[2].mxu0 %v694_v13  ;;  %v920_v3 = vld [vmem:[#allocation8 + $0x2a0] sm:$0xff]  ;;  %v922_v13 = vld [vmem:[#allocation8 + $0x2b0] sm:$0xff]  ;;  %v1179_v34 = vld [vmem:[#allocation9 + $0x68] sm:$0xff] }
  0xd5   : > { %2062 = vmatpush3.bf16.msra.mxu0 %v2059_v4  ;;  %1968 = vmatprep.subr.bf16.mxu1 %v1967_v12  ;;  %v921_v4 = vld [vmem:[#allocation8 + $0x2a8] sm:$0xff]  ;;  %v1174_v25 = vld [vmem:[#allocation9 + $0x40] sm:$0xff] }
  0xd6   : > { %2064 = vmatprep.subr.bf16.mxu0 %v2063_v14  ;;  %1693 = vmatprep.mubr.f32.mxu1 %v370_v19  ;;  %v2095_v10 = vpack.c.bf16 %v921_v4, %v920_v3  ;;  %v594_v19 = vld [vmem:[#allocation8 + $0x140] sm:$0xff]  ;;  %v2135_v3 = vpack.c.bf16 %v1035_v2, %v1034_v1  ;;  %v1036_v4 = vld [vmem:[#allocation8 + $0x350] sm:$0xff] }
  0xd7   : > { %1807 = vmatprep.mubr.f32.mxu0 %v801_v20  ;;  %v595_v20 = vld [vmem:[#allocation8 + $0x148] sm:$0xff]  ;;  %v1178_v33 = vld [vmem:[#allocation9 + $0x60] sm:$0xff] }
  0xd8   : > { %1970 = vmatpush3.bf16.msra.mxu1 %v1967_v12  ;;  %v593_v12 = vld [vmem:[#allocation8 + $0x138] sm:$0xff]  ;;  %v2007_v23 = vpack.c.bf16 %v595_v20, %v594_v19  ;;  %v914_v60 = vld [vmem:[#allocation2 + $0x1f] sm:$0xff] }
  0xd9   : > { %2066 = vmatpush3.bf16.msra.mxu0 %v2063_v14  ;;  %1972 = vmatprep.subr.bf16.mxu1 %v1971_v21  ;;  %v923_v14 = vld [vmem:[#allocation8 + $0x2b8] sm:$0xff]  ;;  %v2003_v17 = vpack.c.bf16 %v593_v12, %v592_v11  ;;  %v1170_v19 = vld [vmem:[#allocation9 + $0x20] sm:$0xff]  ;;  %v1171_v20 = vld [vmem:[#allocation9 + $0x28] sm:$0xff] }
  0xda   : > { %2068 = vmatprep.subr.bf16.mxu0 %v2067_v22  ;;  %v2099_v18 = vpack.c.bf16 %v923_v14, %v922_v13  ;;  %v1041_v11 = vld [vmem:[#allocation8 + $0x378] sm:$0xff]  ;;  %v1166_v13 = vld [vmem:[#allocation9] sm:$0xff]  ;;  %v1167_v14 = vld [vmem:[#allocation9 + $0x8] sm:$0xff] }
  0xdc   : > { %1974 = vmatpush3.bf16.msra.mxu1 %v1971_v21  ;;  %v924_v21 = vld [vmem:[#allocation8 + $0x2c0] sm:$0xff] }
  0xdd   : > { %2070 = vmatpush3.bf16.msra.mxu0 %v2067_v22  ;;  %1976 = vmatprep.subr.bf16.mxu1 %v1975_v27  ;;  %v925_v22 = vld [vmem:[#allocation8 + $0x2c8] sm:$0xff] }
  0xde   : > { %2072 = vmatprep.subr.bf16.mxu0 %v2071_v28  ;;  %v2103_v24 = vpack.c.bf16 %v925_v22, %v924_v21  ;;  %v2159_v21 = vpack.c.bf16 %v1171_v20, %v1170_v19  ;;  %v1172_v22 = vld [vmem:[#allocation9 + $0x30] sm:$0xff] }
  0xe0   : > { %1978 = vmatpush3.bf16.msra.mxu1 %v1975_v27  ;;  %v926_v27 = vld [vmem:[#allocation8 + $0x2d0] sm:$0xff] }
  0xe1   : > { %2074 = vmatpush3.bf16.msra.mxu0 %v2071_v28  ;;  %1980 = vmatprep.subr.bf16.mxu1 %v1979_v35  ;;  %v927_v28 = vld [vmem:[#allocation8 + $0x2d8] sm:$0xff] }
  0xe2   : > { %2076 = vmatprep.subr.bf16.mxu0 %v2075_v36  ;;  %v2107_v32 = vpack.c.bf16 %v927_v28, %v926_v27  ;;  %v2167_v27 = vpack.c.bf16 %v1175_v26, %v1174_v25  ;;  %v1176_v28 = vld [vmem:[#allocation9 + $0x50] sm:$0xff] }
  0xe4   : > { %1982 = vmatpush3.bf16.msra.mxu1 %v1979_v35  ;;  %v928_v35 = vld [vmem:[#allocation8 + $0x2e0] sm:$0xff] }
  0xe5   : > { %2078 = vmatpush3.bf16.msra.mxu0 %v2075_v36  ;;  %1984 = vmatprep.subr.bf16.mxu1 %v1983_v41  ;;  %v929_v36 = vld [vmem:[#allocation8 + $0x2e8] sm:$0xff] }
  0xe6   : > { %2080 = vmatprep.subr.bf16.mxu0 %v2079_v42  ;;  %v2111_v38 = vpack.c.bf16 %v929_v36, %v928_v35  ;;  %v1180_v35 = vld [vmem:[#allocation9 + $0x70] sm:$0xff]  ;;  %v2175_v36 = vpack.c.bf16 %v1179_v34, %v1178_v33 }
  0xe8   : > { %1986 = vmatpush3.bf16.msra.mxu1 %v1983_v41  ;;  %v930_v41 = vld [vmem:[#allocation8 + $0x2f0] sm:$0xff] }
  0xe9   : > { %2082 = vmatpush3.bf16.msra.mxu0 %v2079_v42  ;;  %1988 = vmatprep.subr.bf16.mxu1 %v1987_v47  ;;  %v931_v42 = vld [vmem:[#allocation8 + $0x2f8] sm:$0xff] }
  0xea   : > { %2084 = vmatprep.subr.bf16.mxu0 %v2083_v48  ;;  %v2115_v44 = vpack.c.bf16 %v931_v42, %v930_v41 }
  0xec   : > { %1990 = vmatpush3.bf16.msra.mxu1 %v1987_v47  ;;  %v2119_v47 = vpack.c.bf16 %v1027_v46, %v1026_v45 }
  0xed   : > { %2086 = vmatpush3.bf16.msra.mxu0 %v2083_v48  ;;  %1992 = vmatprep.subr.bf16.mxu1 %v1991_v55  ;;  %v1028_v48 = vld [vmem:[#allocation8 + $0x310] sm:$0xff] }
  0xee   : > { %2088 = vmatprep.subr.bf16.mxu0 %v2087_v56 }
  0xef   : > { %1694 = vmatmul.mubr.f32.vlgmr.msra.gmra.mrb[0].mxu1 %v371_v61  ;;  %v2127_v61 = vpack.c.bf16 %v1031_v58, %v1030_v57 }
  0xf0   : > { %1994 = vmatpush3.bf16.msra.mxu1 %v1991_v55  ;;  %1808 = vmatmul.mubr.f32.vlgmr.msra.gmra.mrb[0].mxu0 %v802_v62  ;;  %v2123_v55 = vpack.c.bf16 %v1029_v50, %v1028_v48  ;;  %v1032_v62 = vld [vmem:[#allocation8 + $0x330] sm:$0xff] }
  0xf1   : > { %2090 = vmatpush3.bf16.msra.mxu0 %v2087_v56  ;;  %1996 = vmatprep.subr.bf16.mxu1 %v1995_v63  ;;  %v913_v56 = vld [vmem:[#allocation2 + $0x17] sm:$0xff] }
  0xf2   : > { %2092 = vmatprep.subr.bf16.mxu0 %v2091_v0  ;;  %1696 = vmatprep.mubr.f32.mxu1 %v372_v5  ;;  %v1037_v5 = vld [vmem:[#allocation8 + $0x358] sm:$0xff] }
  0xf3   : > { %1697 = vmatmul.mubr.f32.gmra.mrb[2].mxu1 %v373_v6  ;;  %1810 = vmatprep.mubr.f32.mxu0 %v803_v7  ;;  %v2139_v6 = vpack.c.bf16 %v1037_v5, %v1036_v4  ;;  %v1038_v7 = vld [vmem:[#allocation8 + $0x360] sm:$0xff] }
  0xf4   : > { %1998 = vmatpush3.bf16.msra.mxu1 %v1995_v63  ;;  %1811 = vmatmul.mubr.f32.gmra.mrb[2].mxu0 %v804_v9  ;;  %v1033_v63 = vld [vmem:[#allocation8 + $0x338] sm:$0xff] }
  0xf5   : > { %2094 = vmatpush3.bf16.msra.mxu0 %v2091_v0  ;;  %2000 = vmatprep.subr.bf16.mxu1 %v1999_v8  ;;  %v2131_v0 = vpack.c.bf16 %v1033_v63, %v1032_v62 }
  0xf6   : > { %2096 = vmatprep.subr.bf16.mxu0 %v2095_v10  ;;  %1731 = vmatprep.mubr.f32.mxu1 %v581_v15  ;;  %v1168_v15 = vld [vmem:[#allocation9 + $0x10] sm:$0xff] }
  0xf7   : > { %1845 = vmatprep.mubr.f32.mxu0 %v911_v16  ;;  %v2151_v16 = vpack.c.bf16 %v1167_v14, %v1166_v13  ;;  %v1456_v14 = vld [vmem:[%s3009_s6] ss:$0 sm:$0xff] }
  0xf8   : > { %2002 = vmatpush3.bf16.msra.mxu1 %v1999_v8  ;;  %v1039_v8 = vld [vmem:[#allocation8 + $0x368] sm:$0xff] }
  0xf9   : > { %2098 = vmatpush3.bf16.msra.mxu0 %v2095_v10  ;;  %2004 = vmatprep.subr.bf16.mxu1 %v2003_v17  ;;  %v2143_v9 = vpack.c.bf16 %v1039_v8, %v1038_v7  ;;  %v1040_v10 = vld [vmem:[#allocation8 + $0x370] sm:$0xff] }
  0xfa   : > { %2100 = vmatprep.subr.bf16.mxu0 %v2099_v18  ;;  %v2147_v12 = vpack.c.bf16 %v1041_v11, %v1040_v10 }
  0xfc   : > { %2006 = vmatpush3.bf16.msra.mxu1 %v2003_v17  ;;  %v1169_v17 = vld [vmem:[#allocation9 + $0x18] sm:$0xff] }
  0xfd   : > { %2102 = vmatpush3.bf16.msra.mxu0 %v2099_v18  ;;  %2008 = vmatprep.subr.bf16.mxu1 %v2007_v23  ;;  %v2155_v18 = vpack.c.bf16 %v1169_v17, %v1168_v15 }
  0xfe   : > { %2104 = vmatprep.subr.bf16.mxu0 %v2103_v24 }
 0x100   : > { %2010 = vmatpush3.bf16.msra.mxu1 %v2007_v23  ;;  %v1173_v23 = vld [vmem:[#allocation9 + $0x38] sm:$0xff] }
 0x101   : > { %2106 = vmatpush3.bf16.msra.mxu0 %v2103_v24  ;;  %2012 = vmatprep.subr.bf16.mxu1 %v2011_v31  ;;  %v2163_v24 = vpack.c.bf16 %v1173_v23, %v1172_v22 }
 0x102   : > { %2108 = vmatprep.subr.bf16.mxu0 %v2107_v32 }
 0x104   : > { %2014 = vmatpush3.bf16.msra.mxu1 %v2011_v31  ;;  %v1177_v31 = vld [vmem:[#allocation9 + $0x58] sm:$0xff] }
 0x105   : > { %2110 = vmatpush3.bf16.msra.mxu0 %v2107_v32  ;;  %2016 = vmatprep.subr.bf16.mxu1 %v2015_v37  ;;  %v2171_v32 = vpack.c.bf16 %v1177_v31, %v1176_v28 }
 0x106   : > { %2112 = vmatprep.subr.bf16.mxu0 %v2111_v38 }
 0x108   : > { %2018 = vmatpush3.bf16.msra.mxu1 %v2015_v37  ;;  %v1181_v37 = vld [vmem:[#allocation9 + $0x78] sm:$0xff] }
 0x109   : > { %2114 = vmatpush3.bf16.msra.mxu0 %v2111_v38  ;;  %2020 = vmatprep.subr.bf16.mxu1 %v2019_v43  ;;  %v2179_v38 = vpack.c.bf16 %v1181_v37, %v1180_v35 }
 0x10a   : > { %2116 = vmatprep.subr.bf16.mxu0 %v2115_v44 }
 0x10c   : > { %2022 = vmatpush3.bf16.msra.mxu1 %v2019_v43 }
 0x10d   : > { %2118 = vmatpush3.bf16.msra.mxu0 %v2115_v44  ;;  %2152 = vmatprep.subr.bf16.mxu1 %v2151_v16  ;;  %v1451_v44 = vld [vmem:[%s2962_s3] ss:$0 sm:$0xff] }
 0x10e   : > { %2120 = vmatprep.subr.bf16.mxu0 %v2119_v47 }
 0x10f   : > { %1732 = vmatmul.mubr.f32.vlgmr.msra.gmra.mrb[0].mxu1 %v582_v51 }
 0x110   : > { %1846 = vmatmul.mubr.f32.vlgmr.msra.gmra.mrb[0].mxu0 %v912_v53  ;;  %1734 = vmatprep.mubr.f32.mxu1 %v583_v54 }
 0x111   : > { %2122 = vmatpush3.bf16.msra.mxu0 %v2119_v47  ;;  %1848 = vmatprep.mubr.f32.mxu0 %v913_v56 }
 0x112   : > { %2124 = vmatprep.subr.bf16.mxu0 %v2123_v55  ;;  %2154 = vmatpush3.bf16.msra.mxu1 %v2151_v16 }
 0x113   : > { %1735 = vmatmul.mubr.f32.gmra.mrb[2].mxu1 %v584_v59  ;;  %2156 = vmatprep.subr.bf16.mxu1 %v2155_v18 }
 0x114   : > { %1849 = vmatmul.mubr.f32.gmra.mrb[2].mxu0 %v914_v60 }
 0x115   : > { %2126 = vmatpush3.bf16.msra.mxu0 %v2123_v55  ;;  %1883 = vmatprep.mubr.f32.mxu0 %v2867_v29 }
 0x116   : > { %2128 = vmatprep.subr.bf16.mxu0 %v2127_v61  ;;  %2158 = vmatpush3.bf16.msra.mxu1 %v2155_v18 }
 0x117   : > { %2160 = vmatprep.subr.bf16.mxu1 %v2159_v21 }
 0x119   : > { %2130 = vmatpush3.bf16.msra.mxu0 %v2127_v61 }
 0x11a   : > { %2132 = vmatprep.subr.bf16.mxu0 %v2131_v0  ;;  %2162 = vmatpush3.bf16.msra.mxu1 %v2159_v21 }
 0x11b   : > { %2164 = vmatprep.subr.bf16.mxu1 %v2163_v24 }
 0x11d   : > { %2134 = vmatpush3.bf16.msra.mxu0 %v2131_v0 }
 0x11e   : > { %2136 = vmatprep.subr.bf16.mxu0 %v2135_v3  ;;  %2166 = vmatpush3.bf16.msra.mxu1 %v2163_v24 }
 0x11f   : > { %2168 = vmatprep.subr.bf16.mxu1 %v2167_v27 }
 0x121   : > { %2138 = vmatpush3.bf16.msra.mxu0 %v2135_v3 }
 0x122   : > { %2140 = vmatprep.subr.bf16.mxu0 %v2139_v6  ;;  %2170 = vmatpush3.bf16.msra.mxu1 %v2167_v27 }
 0x123   : > { %2172 = vmatprep.subr.bf16.mxu1 %v2171_v32 }
 0x125   : > { %2142 = vmatpush3.bf16.msra.mxu0 %v2139_v6 }
 0x126   : > { %2144 = vmatprep.subr.bf16.mxu0 %v2143_v9  ;;  %2174 = vmatpush3.bf16.msra.mxu1 %v2171_v32 }
 0x127   : > { %2176 = vmatprep.subr.bf16.mxu1 %v2175_v36 }
 0x129   : > { %2146 = vmatpush3.bf16.msra.mxu0 %v2143_v9 }
 0x12a   : > { %2148 = vmatprep.subr.bf16.mxu0 %v2147_v12  ;;  %2178 = vmatpush3.bf16.msra.mxu1 %v2175_v36 }
 0x12b   : > { %2180 = vmatprep.subr.bf16.mxu1 %v2179_v38 }
 0x12d   : > { %2150 = vmatpush3.bf16.msra.mxu0 %v2147_v12 }
 0x12e   : > { %2182 = vmatpush3.bf16.msra.mxu1 %v2179_v38 }
 0x130   : > { %1884 = vmatmul.mubr.f32.vlgmr.msra.gmra.mrb[0].mxu0 %v2871_v30 }
 0x131   : > { %1886 = vmatprep.mubr.f32.mxu0 %v2875_v49 }
 0x134   : > { %1887 = vmatmul.mubr.f32.gmra.mrb[2].mxu0 %v2879_v52 }
 0x1e2   : > { %v1733_v39 = vpop.f32.mrb[0].mxu1 }
 0x1e3   : > { %v668_v40 = vpop.f32.mrb[1].mxu1 }
 0x1e6   : > { %v1736_v41 = vpop.f32.mrb[2].mxu1 }
 0x1e7   : > { %v678_v42 = vpop.f32.mrb[3].mxu1 }
 0x203   : > { %v1885_v43 = vpop.f32.mrb[0].mxu0 }
 0x204   : > { %v2183_v45 = vadd.f32 %v1885_v43, %v1733_v39  ;;  %v1108_v46 = vpop.f32.mrb[1].mxu0 }
 0x205   : > { %v2184_v47 = vadd.f32 %v1108_v46, %v668_v40 }
 0x206   : > { %v1139_v48 = vadd.f32 %v2183_v45, %v1451_v44 }
 0x207   : > { %v1138_v50 = vadd.f32 %v2184_v47, %v1451_v44  ;;  %v1888_v51 = vpop.f32.mrb[2].mxu0 }
 0x208   : > { %v1147_v53 = vmin.f32 %v1139_v48, 0.0  ;;  %v2185_v54 = vadd.f32 %v1888_v51, %v1736_v41  ;;  %v1118_v55 = vpop.f32.mrb[3].mxu0  ;;  %vm1143_vm1 = vcmp.gt.f32.partialorder %v1139_v48, 0.0 }
 0x209   : > { %v1146_v56 = vmin.f32 %v1138_v50, 0.0  ;;  %v2186_v57 = vadd.f32 %v1118_v55, %v678_v42  ;;  %vm1142_vm0 = vcmp.gt.f32.partialorder %v1138_v50, 0.0 }
 0x20a   : > { %v1152_v58 = vmul.f32 1.442695, %v1147_v53  ;;  %v1141_v59 = vadd.f32 %v2185_v54, %v1451_v44 }
 0x20b   : > { %v1150_v60 = vmul.f32 1.442695, %v1146_v56  ;;  %v1140_v61 = vadd.f32 %v2186_v57, %v1451_v44 }
 0x20c   : > { %2315 = vpow2.f32 %v1152_v58  ;;  %v1149_v62 = vmin.f32 %v1141_v59, 0.0  ;;  %vm1145_vm3 = vcmp.gt.f32.partialorder %v1141_v59, 0.0 }
 0x20d   : > { %2317 = vpow2.f32 %v1150_v60  ;;  %v1148_v63 = vmin.f32 %v1140_v61, 0.0  ;;  %vm1144_vm2 = vcmp.gt.f32.partialorder %v1140_v61, 0.0 }
 0x20e   : > { %v1156_v0 = vmul.f32 1.442695, %v1149_v62 }
 0x20f   : > { %v1154_v1 = vmul.f32 1.442695, %v1148_v63 }
 0x210   : > { %2319 = vpow2.f32 %v1156_v0 }
 0x211   : > { %2321 = vpow2.f32 %v1154_v1 }
 0x216   : > { %v2316_v2 = vpop.eup %2315 }
 0x217   : > { %v2318_v3 = vpop.eup %2317  ;;  %v1453_v4 = vadd.f32 -1.0, %v2316_v2 }
 0x218   : > { %v1452_v5 = vadd.f32 -1.0, %v2318_v3 }
 0x219   : > { %v1163_v9 = vsel %vm1143_vm1, %v1139_v48, %v1453_v4 }
 0x21a   : > { %v2320_v6 = vpop.eup %2319  ;;  %v1162_v7 = vsel %vm1142_vm0, %v1138_v50, %v1452_v5 }
 0x21b   : > { %v2322_v8 = vpop.eup %2321  ;;  %1921 = vmatprep.mubr.f32.mxu1 %v1162_v7  ;;  %v1455_v10 = vadd.f32 -1.0, %v2320_v6 }
 0x21c   : > { %1922 = vmatmul.mubr.f32.vlgmr.msra.gmra.mrb[4].mxu1 %v1163_v9  ;;  %v1454_v11 = vadd.f32 -1.0, %v2322_v8 }
 0x21d   : > { %v1165_v13 = vsel %vm1145_vm3, %v1141_v59, %v1455_v10 }
 0x21e   : > { %v1164_v12 = vsel %vm1144_vm2, %v1140_v61, %v1454_v11 }
 0x21f   : > { %1924 = vmatprep.mubr.f32.mxu1 %v1164_v12 }
 0x220   : > { %1925 = vmatmul.mubr.f32.gmra.mrb[6].mxu1 %v1165_v13 }
 0x2ef   : > { %v1923_v15 = vpop.f32.mrb[4].mxu1 }
 0x2f0   : > { %v1261_v16 = vadd.f32 %v1923_v15, %v1456_v14  ;;  %v1255_v17 = vpop.f32.mrb[5].mxu1 }
 0x2f1   : > { %v1256_v18 = vadd.f32 %v1456_v14, %v1255_v17 }
 0x2f2   : > { %v1275_v19 = vadd.f32 %v1261_v16, %v2871_v30 }
 0x2f3   : > { %v1274_v20 = vadd.f32 %v1256_v18, %v2867_v29  ;;  %v1926_v21 = vpop.f32.mrb[6].mxu1 }
 0x2f4   : > { %1279 = vst [vmem:[%s357_s15 + $0x8] sm:$0xff] %v1275_v19  ;;  %v1271_v22 = vadd.f32 %v1926_v21, %v1456_v14  ;;  %v1265_v23 = vpop.f32.mrb[7].mxu1 }
 0x2f5   : > { %1278 = vst [vmem:[%s357_s15] sm:$0xff] %v1274_v20  ;;  %v1266_v24 = vadd.f32 %v1456_v14, %v1265_v23 }
 0x2f6   : > { %v1277_v30 = vadd.f32 %v1271_v22, %v2879_v52 }
 0x2f7   : > { %v1276_v29 = vadd.f32 %v1266_v24, %v2875_v49 }
 0x2f8   : > { %1281 = vst [vmem:[%s357_s15 + $0x18] sm:$0xff] %v1277_v30 }
 0x2f9   : > { %1280 = vst [vmem:[%s357_s15 + $0x10] sm:$0xff] %v1276_v29 }
 0x2fa   : > { %2452 = shalt.err (!%p2449_p13)
}
 0x2fb   : > { %s2453_s18 = scalar_lea.hbm %s2904_s19, 512  ;;  %s2457_s7 = scalar_lea.hbm %s3011_s12, 2048 }
 0x2fc   : > { %p2454_p10 = scmp.ne.s32.totalorder %s2904_s19, %s2453_s18  ;;  %p2458_p3 = scmp.lt.u32.totalorder %s2904_s19, %s3011_s12 }
 0x2fd   : > { %p2459_p7 = scmp.lt.u32.totalorder %s2457_s7, %s2453_s18  ;;  %p2461_p1 = scmp.lt.u32.totalorder %s2453_s18, %s2904_s19 }
 0x2fe   : > { %p2455_p5 = pnand %p2454_p10, %p2739_p8 }
 0x2ff   : > { %p2460_p12 = por %p2459_p7, %p2458_p3 }
 0x300   : > { %p2456_p0 = pneg %p2455_p5 }
 0x301   : > { %p2462_p2 = por %p2461_p1, %p2460_p12 }
 0x303   : > { %p2463_p9 = pnand %p2462_p2, %p2456_p0 }
 0x305   : > { %2466 = shalt.err (!%p2463_p9)
}
 0x306   : > { %s2558_s6 = smov 128   ;;  %s2559_s2 = smov 8  }
 0x307   : > { %2219 = dma.vmem_to_hbm [thread:$0]  (%p2739_p8), %s2898_s17, 512, %s2904_s19, %s1283_s14, %s2558_s6, %s2558_s6, %s2559_s2  }
 0x308 PF: > { %s3012_s5 = sld [smem:[#allocation17_spill]]  ;;  %s3013_s20 = sld [smem:[#allocation18_spill]] }
 0x309   : > { %p2244_p4 = scmp.ge.s32.totalorder %s2549_s28, 2 }
 0x30e   : > { %s1313_s15 = sand.u32 1, %s3012_s5   ;;  %p3014_p6 = scmp.ne.s32.totalorder %s3013_s20, 0 }
 0x30f   : > { %s1314_s30 = scalar_lea.sflag [#allocation5], %s1313_s15 }
 0x310   : > { %p2236_p11 = pnand %p2244_p4, %p3014_p6 }
 0x312   : > { %2516 = dma.done.wait (!%p2236_p11), %s1314_s30, 512  }
 0x313   : > { %2518 = vsyncadd (!%p2236_p11), %s1314_s30, 4294966784  ;;  %s26_s28 = sadd.s32 1, %s2549_s28   ;;  %s3015_s24 = sld [smem:[#allocation22_spill]] }
 0x314   : > { %p23_p13 = scmp.ge.s32.totalorder %s26_s28, 6   ;;  %s3016_s4 = sld [smem:[#allocation19_spill]] }
 0x315   : > { %s3017_s17 = sld [smem:[#allocation21_spill]]  ;;  %s3018_s21 = smov %s2525_s22 }
 0x316   : > { %s3019_s22 = smov %s2529_s23  ;;  %s3022_s25 = smov %s2545_s27 }
 0x317   :  { %25 = sbr.rel (!%p23_p13) target bundleno = 16 (0x10), region = 116 }
 0x319   : > { %s3020_s23 = smov %s3015_s24  ;;  %s3021_s24 = smov %s2541_s26 }
 0x31a   : > { %s3023_s26 = smov %s3016_s4 }
 0x31b   : > { %s3024_s27 = smov %s3017_s17 }
 0x31e   :  { %1319 = vsyncpa [#allocation4], 1 }
 0x31f   :  { %1321 = vsyncpa [#allocation4 + $0x1], 1 }
 0x320   :  { %1322 = vsyncpa [#allocation7], 1 }
 0x321   :  { %1324 = vsyncpa [#allocation7 + $0x1], 1 }
 0x322   :  { %1325 = vsyncpa [#allocation10], 1 }
 0x323   :  { %1326 = vsyncpa [#allocation5], 1 }
 0x324   :  { %1328 = vsyncpa [#allocation5 + $0x1], 1 }

</bundles_post_ra>
